<compile_context>
chip_gen: v7x
topology: tpu7x:2x2x1
jax: 0.10.0
libtpu: 0.0.40
codegen_flags: <defaults>
</compile_context>

<pallas_src>
import functools

import jax
import jax.numpy as jnp
from jax.experimental import pallas as pl
from jax.experimental.pallas import tpu as pltpu


def _round_up(x, m):
    return ((x + m - 1) // m) * m


# ---------------------------------------------------------------------------
# Pallas kernel: one (Cout_p, TM) output tile = W (Cout_p, Cin_p) @ X (Cin_p, TM)
# ---------------------------------------------------------------------------
def _conv1x1_kernel(x_ref, w_ref, o_ref):
    # x_ref: (Cin_p, TM)   w_ref: (Cout_p, Cin_p)   o_ref: (Cout_p, TM)
    o_ref[...] = jnp.dot(
        w_ref[...], x_ref[...], preferred_element_type=jnp.float32
    ).astype(o_ref.dtype)


def down_ffc_forward(x, weight, *, tile_m=8192, compute_dtype=jnp.bfloat16):
    """DOWN_FFC.forward: returns (convl2l(x), 0).

    x:      (N, Cin, H, W) float32, NCHW (PyTorch convention)
    weight: (Cout, Cin) float32 — the 1x1 conv weight with the trailing 1x1
            spatial dims squeezed.
    compute_dtype: dtype of the streamed operands (bf16 default for HBM
            bandwidth; pass jnp.float32 for bit-faithful numerics).
            Accumulation is always f32 and the output is f32.
    """
    n, cin, h, w = x.shape
    cout = weight.shape[0]
    hw = h * w
    itemsize = jnp.dtype(compute_dtype).itemsize

    # ---- optional batch packing: two batch elements per grid step via a
    # block-diagonal weight, filling the (8,128) output sublane tile (Cout=4).
    pack = 2 if (n % 2 == 0 and n >= 2 and 2 * cout <= 8) else 1
    if pack == 2:
        x_flat = x.reshape(n // pack, pack * cin, hw)
        w_blk = jnp.zeros((pack * cout, pack * cin), weight.dtype)
        w_blk = w_blk.at[:cout, :cin].set(weight).at[cout:, cin:].set(weight)
        nb, cin_p, cout_p = n // pack, pack * cin, pack * cout
    else:
        x_flat = x.reshape(n, cin, hw)
        w_blk = weight
        nb, cin_p, cout_p = n, cin, cout

    # bf16 (or requested dtype) traffic; reshape-only, no transposes, so the
    # lane (last) dim stays the spatial size -> lane-dense, unmasked stores.
    x_flat = x_flat.astype(compute_dtype)
    w_blk = w_blk.astype(compute_dtype)

    # ---- tile derivation: TM is always a multiple of 128; grid uses cdiv and
    # a ragged last tile (edge writeback is masked by Pallas). No full-extent
    # fallback -> bounded VMEM footprint on every generation.
    tile_m = max((tile_m // 128) * 128, 128)
    tm = min(tile_m, _round_up(hw, 128))
    # Guarantee >= 2 total grid steps so both v7x TensorCores get work
    # (harmless on single-TC v5e/v6e).
    if nb * pl.cdiv(hw, tm) < 2 and hw > 128:
        tm = max(_round_up(pl.cdiv(hw, 2), 128), 128)
    grid = (nb, pl.cdiv(hw, tm))

    # Per-step VMEM footprint (double-buffered in/out + resident weight),
    # with generous headroom; capped at v7x's 64 MiB physical VMEM.
    x_blk_bytes = cin_p * tm * itemsize
    o_blk_bytes = cout_p * tm * 4
    w_bytes = cout_p * cin_p * itemsize
    footprint = 2 * (x_blk_bytes + o_blk_bytes) + w_bytes
    vmem_limit = min(64 * 1024 * 1024, max(4 * footprint, 16 * 1024 * 1024))

    cost = pl.CostEstimate(
        flops=2 * cout * cin * n * hw,
        bytes_accessed=n * cin * hw * itemsize + n * cout * hw * 4 + w_bytes,
        transcendentals=0,
    )

    out_flat = pl.pallas_call(
        _conv1x1_kernel,
        out_shape=jax.ShapeDtypeStruct((nb, cout_p, hw), jnp.float32),
        grid=grid,
        in_specs=[
            # (1, Cin_p, TM) block, leading batch dim squeezed out of the ref.
            pl.BlockSpec((None, cin_p, tm), lambda b, m: (b, 0, m)),
            # Tiny weight tile, same block every grid step (stays resident).
            pl.BlockSpec((cout_p, cin_p), lambda b, m: (0, 0)),
        ],
        out_specs=pl.BlockSpec((None, cout_p, tm), lambda b, m: (b, 0, m)),
        compiler_params=pltpu.CompilerParams(
            # No cross-tile reduction: every grid axis is independent.
            dimension_semantics=("parallel", "parallel"),
            vmem_limit_bytes=vmem_limit,
        ),
        cost_estimate=cost,
    )(x_flat, w_blk)

    out_xl = out_flat.reshape(n, cout, h, w)
    return out_xl, 0


# ---------------------------------------------------------------------------
# Example / self-test
# ---------------------------------------------------------------------------
if __name__ == "__main__":
    key = jax.random.PRNGKey(0)
    kx, kw = jax.random.split(key)

    N, H, W = 2, 16, 16
    in_channels, out_channels, ratio_gout = 16, 16, 0.75
    out_cl = out_channels - int(out_channels * ratio_gout)  # = 4 (DOWN_FFC __init__)

    x = jax.random.normal(kx, (N, in_channels, H, W), jnp.float32)
    weight = jax.random.normal(kw, (out_cl, in_channels), jnp.float32) / jnp.sqrt(
        float(in_channels)
    )

    fwd = jax.jit(functools.partial(down_ffc_forward))
    out_xl, zero = fwd(x, weight)
    jax.block_until_ready(out_xl)

    assert out_xl.shape == (N, out_cl, H, W), out_xl.shape
    assert int(zero) == 0

    # Reference: a 1x1 conv in NCHW is exactly this channel contraction.
    ref = jnp.einsum("oc,nchw->nohw", weight, x)
    assert bool(jnp.all(jnp.isfinite(out_xl)))
    # bf16 streamed operands with f32 accumulation: accept ~1% relative error
    # for the 16-term contraction (documented tradeoff for HBM bandwidth).
    assert bool(jnp.allclose(out_xl, ref, atol=5e-2, rtol=5e-2)), float(
        jnp.max(jnp.abs(out_xl - ref))
    )

    print("KERNEL_OK")
</pallas_src>

<mosaic_0001>
module attributes {stable_mosaic.version = 11 : i64} {
  func.func @_conv1x1_kernel(%arg0: i32, %arg1: i32, %arg2: memref<1x32x128xbf16, #tpu.memory_space<vmem>>, %arg3: memref<8x32xbf16, #tpu.memory_space<vmem>>, %arg4: memref<1x8x128xf32, #tpu.memory_space<vmem>>) attributes {dimension_semantics = [#tpu.dimension_semantics<parallel>, #tpu.dimension_semantics<parallel>], iteration_bounds = array<i64: 1, 2>, scalar_prefetch = 0 : i64, scratch_operands = 0 : i64, tpu.core_type = #tpu.core_type<tc>, window_params = [{transform_indices = @transform_0, window_bounds = array<i64: 1, 32, 128>}, {pipeline_mode = #tpu.pipeline_mode<synchronous>, transform_indices = @transform_1, window_bounds = array<i64: 8, 32>}, {transform_indices = @transform_2, window_bounds = array<i64: 1, 8, 128>}]} {
    %c0 = arith.constant 0 : index
    %c0_0 = arith.constant 0 : index
    %0 = vector.load %arg3[%c0, %c0_0] : memref<8x32xbf16, #tpu.memory_space<vmem>>, vector<8x32xbf16>
    %c0_1 = arith.constant 0 : index
    %c0_2 = arith.constant 0 : index
    %c0_3 = arith.constant 0 : index
    %1 = vector.load %arg2[%c0_1, %c0_2, %c0_3] : memref<1x32x128xbf16, #tpu.memory_space<vmem>>, vector<1x32x128xbf16>
    %2 = vector.shape_cast %1 : vector<1x32x128xbf16> to vector<32x128xbf16>
    %cst = arith.constant dense<0.000000e+00> : vector<8x128xf32>
    %3 = tpu.matmul %0, %2, %cst {dimension_numbers = #tpu.dot_dimension_numbers<[1], [0], [0], [1], [0, 0, 1, 1], [], []>} : vector<8x32xbf16>, vector<32x128xbf16>, vector<8x128xf32> -> vector<8x128xf32>
    %c0_4 = arith.constant 0 : index
    %c0_5 = arith.constant 0 : index
    %c0_6 = arith.constant 0 : index
    %4 = vector.load %arg4[%c0_4, %c0_5, %c0_6] : memref<1x8x128xf32, #tpu.memory_space<vmem>>, vector<1x8x128xf32>
    %5 = vector.shape_cast %4 : vector<1x8x128xf32> to vector<8x128xf32>
    %6 = vector.shape_cast %3 : vector<8x128xf32> to vector<1x8x128xf32>
    tpu.vector_store %arg4[%c0_4, %c0_5, %c0_6], %6 {strides = array<i32>} : memref<1x8x128xf32, #tpu.memory_space<vmem>>, vector<1x8x128xf32>,
    return
  }
  func.func @transform_0(%arg0: i32, %arg1: i32) -> (i32, i32, i32) {
    %c0_i32 = arith.constant 0 : i32
    %c0_i32_0 = arith.constant 0 : i32
    return %arg0, %c0_i32, %arg1 : i32, i32, i32
  }
  func.func @transform_1(%arg0: i32, %arg1: i32) -> (i32, i32) {
    %c0_i32 = arith.constant 0 : i32
    %c0_i32_0 = arith.constant 0 : i32
    %c0_i32_1 = arith.constant 0 : i32
    return %c0_i32, %c0_i32_0 : i32, i32
  }
  func.func @transform_2(%arg0: i32, %arg1: i32) -> (i32, i32, i32) {
    %c0_i32 = arith.constant 0 : i32
    %c0_i32_0 = arith.constant 0 : i32
    return %arg0, %c0_i32, %arg1 : i32, i32, i32
  }
}

</mosaic_0001>

<bundles_post_ra>
// kernel: down_ffc_forward.1
= control target key start
LH: loop header
LB: loop body
LE: loop exit
PB: predicated region body
PF: predicated region fallthrough
CT: control target
= control target key end

     0   :  { %s495_s9 = smov 0   ;;  %s497_s10 = smov 0   ;;  %s564_s0 = inlined_call_operand.vmem [shape: bf16[1,32,256], index: 0, kind: input, shape index: {}]   ;;  %s565_s1 = inlined_call_operand.vmem [shape: bf16[8,32], index: 1, kind: input, shape index: {}]   ;;  %s566_s2 = inlined_call_operand.vmem [shape: f32[1,8,256], index: 2, kind: output, shape index: {}]  }
   0x1   :  { %s499_s11 = smov 0   ;;  %s501_s12 = smov 0  }
   0x2   :  { %s503_s13 = smov 0  }
   0x3 LB: > { %s21_s14 = sadd.s32 1, %s472_s12  ;;  %p40_p1 = scmp.ne.s32.totalorder %s464_s10, %s460_s9  ;;  %s476_s13 = sphi %s503_s13, %s12_s13   ;;  %s472_s12 = sphi %s501_s12, %s570_s12   ;;  %s468_s11 = sphi %s499_s11, %s569_s11   ;;  %s464_s10 = sphi %s497_s10, %s568_s10   ;;  %s460_s9 = sphi %s495_s9, %s567_s9  }
   0x4   : > { %p22_p0 = scmp.ge.s32.totalorder %s21_s14, 2  ;;  %p41_p2 = scmp.eq.s32.totalorder %s476_s13, 0 }
   0x5   : > { %s33_s16 = sadd.s32 1, %s464_s10  ;;  %p372_p5 = scmp.ge.s32.totalorder %s476_s13, 2 }
   0x6   : > { %s572_s14 = smov (%p22_p0, %s21_s14), 0  ;;  %p42_p3 = por %p41_p2, %p40_p1 }
   0x7   : > { %s29_s15 = ssub.s32 %s472_s12, %s572_s14  ;;  %118 = sbr.rel (%p372_p5) target bundleno = 21 (0x15), region = 20 }
   0x8   : > { %p31_p4 = scmp.eq.s32.totalorder %s29_s15, 0 }
   0xa   : > { %s530_s17 = scalar_select %p31_p4, %s464_s10, %s33_s16  }
   0xe   : > { %121 = sbr.rel (!%p42_p3) target bundleno = 21 (0x15), region = 24  ;;  %s123_s18 = sand.u32 (%p42_p3), 1, %s464_s10  }
   0xf   : > { %s374_s19 = sshll.u32 (%p42_p3), %s472_s12, 2  ;;  %s373_s20 = sshll.u32 (%p42_p3), %s123_s18, 4 }
  0x10   : > { %s129_s23 = scalar_lea.vmem (%p42_p3), %s564_s0, %s374_s19  ;;  %s125_s24 = scalar_lea.vmem (%p42_p3), [#allocation2], %s373_s20 }
  0x11   : > { %v145_v0 = vld [vmem:[%s129_s23] sm:$0xf] (%p42_p3)  ;;  %v147_v1 = vld [vmem:[%s129_s23 + $0x8] sm:$0xf] (%p42_p3)  ;;  %v149_v2 = vld [vmem:[%s129_s23 + $0x10] sm:$0xf] (%p42_p3) }
  0x12   : > { %146 = vst [vmem:[%s125_s24] sm:$0xf] (%p42_p3), %v145_v0  ;;  %148 = vst [vmem:[%s125_s24 + $0x4] sm:$0xf] (%p42_p3), %v147_v1  ;;  %v151_v3 = vld [vmem:[%s129_s23 + $0x18] sm:$0xf] (%p42_p3) }
  0x13   : > { %150 = vst [vmem:[%s125_s24 + $0x8] sm:$0xf] (%p42_p3), %v149_v2  ;;  %152 = vst [vmem:[%s125_s24 + $0xc] sm:$0xf] (%p42_p3), %v151_v3 }
  0x15 PF: > { %p375_p6 = scmp.ge.s32.totalorder %s476_s13, 1  ;;  %p182_p7 = scmp.lt.s32.totalorder %s476_s13, 3 }
  0x17   : > { %p183_p8 = pnand %p375_p6, %p182_p7 }
  0x18   : > { %s189_s25 = sand.u32 (!%p183_p8), 1, %s460_s9   ;;  %v478_v4 = vmov (!%p183_p8), 0.0   ;;  %vm479_vm0 = vmmov (!%p183_p8), 0   ;;  %v222_v7 = vld [vmem:[%s565_s1] sm:$0xf] (!%p183_p8)  ;;  %vm239_vm1 = vcmask (!%p183_p8), 261120  }
  0x19   : > { %186 = sbr.rel (%p183_p8) target bundleno = 250 (0xfa), region = 65  ;;  %386 = vmatprep.subr.bf16.mxu0 (!%p183_p8), %v478_v4  ;;  %s376_s26 = sshll.u32 (!%p183_p8), %s189_s25, 4  ;;  %390 = vmatprep.mubr.msk.bf16.mxu0 (!%p183_p8), %vm479_vm0, %v478_v4 }
  0x1a   : > { %s191_s27 = scalar_lea.vmem (!%p183_p8), [#allocation2], %s376_s26  ;;  %p215_p9 = scmp.lt.s32.totalorder (!%p183_p8), %s468_s11, 1 }
  0x1b   : > { %v436_v5 = vld [vmem:[%s191_s27] sm:$0xff] (!%p183_p8)   ;;  %v437_v6 = vld [vmem:[%s191_s27 + $0x8] sm:$0xff] (!%p183_p8)  }
  0x1c   : > { %387 = vmatpush3.bf16.msra.mxu0 (!%p183_p8), %v436_v5 }
  0x1d   : > { %388 = vmatprep.subr.bf16.mxu0 (!%p183_p8), %v478_v4 }
  0x20   : > { %389 = vmatpush3.bf16.msra.mxu0 %v437_v6  ;;  %s574_s11 = smov (!%p215_p9, %s468_s11), 1 }
  0x21   : > { %s377_s30 = sshll.u32 %s574_s11, 3 }
  0x22   : > { %s220_s5 = scalar_lea.vmem %s566_s2, %s377_s30 }
  0x23   : > { %391 = vmatmul.mubr.msk.bf16.vlgmr.msra.gmra.mrb[0].mxu0 %vm239_vm1, %v222_v7 }
  0xf6   : > { %v277_v8 = vpop.f32.mrb[0].mxu0 }
  0xf7   : > { %283 = vst [vmem:[%s220_s5] sm:$0xff] %v277_v8  ;;  %v392_v9 = vpop.f32.mrb[1].mxu0 }
  0xf8   : > { %v280_v10 = vpop.f32.mrb[2].mxu0 }
  0xf9   : > { %v393_v11 = vpop.f32.mrb[3].mxu0 }
  0xfa PF: > { %s12_s13 = sadd.s32 1, %s476_s13   ;;  %s567_s9 = smov %s464_s10 }
  0xfb   : > { %p9_p10 = scmp.ge.s32.totalorder %s12_s13, 4   ;;  %s568_s10 = smov %s530_s17 }
  0xfc   : > { %s569_s11 = smov %s472_s12  ;;  %s570_s12 = smov %s572_s14 }
  0xfd   :  { %11 = sbr.rel (!%p9_p10) target bundleno = 3 (0x3), region = 104 }

</bundles_post_ra>
